<compile_context>
chip_gen: v5e
topology: v5e:2x2
jax: 0.10.0
libtpu: 0.0.40
codegen_flags: <defaults>
</compile_context>

<pallas_src>
import functools

import jax
import jax.numpy as jnp
import numpy as np
from jax.experimental import pallas as pl
from jax.experimental.pallas import tpu as pltpu  # noqa: F401  (TPU backend)

# Small, module-consistent shapes.
B, CIN, H, W = 2, 4, 16, 16
CENC = 32
KH = KW = 3
K_IM2COL = KH * KW * CIN          # 36
K_EXT = K_IM2COL + 1              # 37 (ones row for folded encoder bias)
BHW = B * H * W                   # 512 (lane-dense)
APPLY_SIGMOID = True              # configs['Model']['Sigmoid'] == 'True'


def _cd_kernel(patches_ref, wenc_ref, wdec_ref, o_ref, *, apply_sigmoid: bool):
  """Whole batch in one program (feature-major / lane-dense layout).

  patches_ref: (K_EXT, BHW)    im2col'd input + ones row (bias column feed)
  wenc_ref   : (CENC, K_EXT)   encoder conv weights with benc as last column
  wdec_ref   : (1, CENC + 1)   decoder 1x1 weights with bdec in the last lane
  o_ref      : (1, BHW)        decoded (sigmoid-ed) output, lane-dense
  """
  # Encoder: 3x3 conv + bias as ONE (CENC, 37) @ (37, BHW) MXU matmul.
  enc = jnp.dot(wenc_ref[...], patches_ref[...],
                preferred_element_type=jnp.float32)
  enc = jnp.maximum(enc, 0.0)                                        # ReLU

  # Decoder: 1x1 conv as (1, CENC) @ (CENC, BHW) on the MXU, + scalar bias.
  dec = jnp.dot(wdec_ref[:, :CENC], enc,
                preferred_element_type=jnp.float32)
  dec = dec + wdec_ref[:, CENC:]          # (1,1) lane-broadcast bias add

  if apply_sigmoid:
    # Numerically stable sigmoid: 1 + exp(-|x|) is in [1, 2] -> no overflow.
    e = jnp.exp(-jnp.abs(dec))                      # EUP
    pos = pl.reciprocal(1.0 + e, approx=False)      # exact; 4 vregs, ~free
    dec = jnp.where(dec >= 0.0, pos, 1.0 - pos)

  o_ref[...] = dec


def prepare_params(params):
  """One-time weight prep (hoisted off the per-call path)."""
  wenc, benc, wdec, bdec = params
  # HWIO -> (K_IM2COL, CENC) with row index (ky*KW + kx)*CIN + cin, then
  # transpose and append the encoder bias as an extra K column.
  wenc_t = jnp.transpose(wenc.reshape(K_IM2COL, CENC))            # (CENC, 36)
  wenc_ext = jnp.concatenate(
      [wenc_t, benc.reshape(CENC, 1)], axis=1).astype(jnp.float32)  # (CENC, 37)
  # Decoder weights transposed, with the decoder bias packed into the last lane.
  wdec_t = jnp.transpose(wdec.reshape(CENC, 1))                   # (1, CENC)
  wdec_ext = jnp.concatenate(
      [wdec_t, bdec.reshape(1, 1)], axis=1).astype(jnp.float32)   # (1, CENC+1)
  return wenc_ext, wdec_ext


def cd_forward(x_nchw, wenc_ext, wdec_ext, apply_sigmoid=APPLY_SIGMOID):
  """Pallas implementation of Distributed_CD_Model.forward (NCHW in/out)."""
  x = x_nchw.astype(jnp.float32)

  # Channel-major transpose on the small (8 KiB) input, BEFORE the 9x tap
  # stack, so the patch slab reshapes straight to (36, BHW) with no 5-D
  # transpose of the blown-up stack.
  x_cf = jnp.transpose(x, (1, 0, 2, 3))                    # (CIN, B, H, W)
  x_pad = jnp.pad(x_cf, ((0, 0), (0, 0), (1, 1), (1, 1)))  # conv padding=1
  taps = [x_pad[:, :, ky:ky + H, kx:kx + W]                # each (CIN, B, H, W)
          for ky in range(KH) for kx in range(KW)]
  patches = jnp.stack(taps, axis=0).reshape(K_IM2COL, BHW)  # (36, BHW)
  # Ones row feeds the folded encoder bias column (K pads 36->40 sublanes
  # anyway, so the extra row is free on the MXU).
  patches_ext = jnp.concatenate(
      [patches, jnp.ones((1, BHW), jnp.float32)], axis=0)   # (37, BHW)

  kernel = functools.partial(_cd_kernel, apply_sigmoid=apply_sigmoid)
  # No grid: whole problem (<100 KB) fits VMEM on every generation; a single
  # program avoids all per-grid-step fixed cost.  Only 3 input DMAs.
  out = pl.pallas_call(
      kernel,
      out_shape=jax.ShapeDtypeStruct((1, BHW), jnp.float32),
  )(patches_ext, wenc_ext, wdec_ext)

  # (1, B*H*W) -> NCHW (B, 1, H, W); flattening order was (b, h, w).
  return out.reshape(B, 1, H, W)


def cd_reference(x_nchw, params, apply_sigmoid=APPLY_SIGMOID):
  """Pure-JAX reference (same math, XLA conv)."""
  wenc, benc, wdec, bdec = params
  x_nhwc = jnp.transpose(x_nchw, (0, 2, 3, 1)).astype(jnp.float32)
  enc = jax.lax.conv_general_dilated(
      x_nhwc, wenc, window_strides=(1, 1), padding="SAME",
      dimension_numbers=("NHWC", "HWIO", "NHWC"))
  enc = jnp.maximum(enc + benc.reshape(1, 1, 1, CENC), 0.0)
  dec = jnp.einsum("bhwc,co->bhwo", enc, wdec) + bdec.reshape(1, 1, 1, 1)
  if apply_sigmoid:
    dec = jax.nn.sigmoid(dec)
  return jnp.transpose(dec, (0, 3, 1, 2))


def init_params(key):
  k1, k2, k3, k4 = jax.random.split(key, 4)
  wenc = 0.1 * jax.random.normal(k1, (KH, KW, CIN, CENC), jnp.float32)
  benc = 0.1 * jax.random.normal(k2, (1, CENC), jnp.float32)
  wdec = 0.1 * jax.random.normal(k3, (CENC, 1), jnp.float32)
  bdec = 0.1 * jax.random.normal(k4, (1, 1), jnp.float32)
  return wenc, benc, wdec, bdec


if __name__ == "__main__":
  key = jax.random.PRNGKey(0)
  pkey, xkey = jax.random.split(key)
  params = init_params(pkey)
  # Weight prep happens once, off the per-step path.
  wenc_ext, wdec_ext = prepare_params(params)
  wenc_ext, wdec_ext = jax.block_until_ready((wenc_ext, wdec_ext))

  x = jax.random.normal(xkey, (B, CIN, H, W), jnp.float32)

  fwd = jax.jit(cd_forward)
  out = jax.block_until_ready(fwd(x, wenc_ext, wdec_ext))

  ref = jax.block_until_ready(cd_reference(x, params))
  assert out.shape == (B, 1, H, W), out.shape
  assert np.all(np.isfinite(np.asarray(out)))
  np.testing.assert_allclose(np.asarray(out), np.asarray(ref),
                             atol=2e-2, rtol=2e-2)
  print("KERNEL_OK")
</pallas_src>

<mosaic_0001>
module attributes {stable_mosaic.version = 11 : i64} {
  func.func @_cd_kernel(%arg0: memref<37x512xf32, #tpu.memory_space<vmem>>, %arg1: memref<32x37xf32, #tpu.memory_space<vmem>>, %arg2: memref<1x33xf32, #tpu.memory_space<vmem>>, %arg3: memref<1x512xf32, #tpu.memory_space<vmem>>) attributes {dimension_semantics = [], scalar_prefetch = 0 : i64, scratch_operands = 0 : i64, tpu.core_type = #tpu.core_type<tc>} {
    %c0 = arith.constant 0 : index
    %c0_0 = arith.constant 0 : index
    %0 = vector.load %arg1[%c0, %c0_0] : memref<32x37xf32, #tpu.memory_space<vmem>>, vector<32x37xf32>
    %c0_1 = arith.constant 0 : index
    %c0_2 = arith.constant 0 : index
    %1 = vector.load %arg0[%c0_1, %c0_2] : memref<37x512xf32, #tpu.memory_space<vmem>>, vector<37x512xf32>
    %cst = arith.constant dense<0.000000e+00> : vector<32x512xf32>
    %2 = tpu.matmul %0, %1, %cst {dimension_numbers = #tpu.dot_dimension_numbers<[1], [0], [0], [1], [0, 0, 1, 1], [], []>} : vector<32x37xf32>, vector<37x512xf32>, vector<32x512xf32> -> vector<32x512xf32>
    %cst_3 = arith.constant 0.000000e+00 : f32
    %3 = vector.broadcast %cst_3 : f32 to vector<32x512xf32>
    %4 = arith.maximumf %2, %3 : vector<32x512xf32>
    %c0_4 = arith.constant 0 : index
    %c0_5 = arith.constant 0 : index
    %5 = vector.load %arg2[%c0_4, %c0_5] : memref<1x33xf32, #tpu.memory_space<vmem>>, vector<1x32xf32>
    %cst_6 = arith.constant dense<0.000000e+00> : vector<1x512xf32>
    %6 = tpu.matmul %5, %4, %cst_6 {dimension_numbers = #tpu.dot_dimension_numbers<[1], [0], [0], [1], [0, 0, 1, 1], [], []>} : vector<1x32xf32>, vector<32x512xf32>, vector<1x512xf32> -> vector<1x512xf32>
    %c0_7 = arith.constant 0 : index
    %c32 = arith.constant 32 : index
    %7 = vector.load %arg2[%c0_7, %c32] : memref<1x33xf32, #tpu.memory_space<vmem>>, vector<1x1xf32>
    %8 = vector.broadcast %7 : vector<1x1xf32> to vector<1x512xf32>
    %9 = arith.addf %6, %8 : vector<1x512xf32>
    %10 = math.absf %9 : vector<1x512xf32>
    %cst_8 = arith.constant 0.000000e+00 : f32
    %11 = vector.broadcast %cst_8 : f32 to vector<1x512xf32>
    %12 = arith.subf %11, %10 : vector<1x512xf32>
    %13 = math.exp %12 : vector<1x512xf32>
    %cst_9 = arith.constant 1.000000e+00 : f32
    %14 = vector.broadcast %cst_9 : f32 to vector<1x512xf32>
    %15 = arith.addf %14, %13 : vector<1x512xf32>
    %16 = tpu.reciprocal %15 : vector<1x512xf32> -> vector<1x512xf32>
    %cst_10 = arith.constant 0.000000e+00 : f32
    %17 = vector.broadcast %cst_10 : f32 to vector<1x512xf32>
    %18 = arith.cmpf oge, %9, %17 : vector<1x512xf32>
    %cst_11 = arith.constant 1.000000e+00 : f32
    %19 = vector.broadcast %cst_11 : f32 to vector<1x512xf32>
    %20 = arith.subf %19, %16 : vector<1x512xf32>
    %21 = arith.select %18, %16, %20 : vector<1x512xi1>, vector<1x512xf32>
    %c0_12 = arith.constant 0 : index
    %c0_13 = arith.constant 0 : index
    %22 = vector.load %arg3[%c0_12, %c0_13] : memref<1x512xf32, #tpu.memory_space<vmem>>, vector<1x512xf32>
    tpu.vector_store %arg3[%c0_12, %c0_13], %21 {strides = array<i32>} : memref<1x512xf32, #tpu.memory_space<vmem>>, vector<1x512xf32>,
    return
  }
}

</mosaic_0001>

<bundles_post_ra>
// kernel: cd_forward.1
= control target key start
LH: loop header
LB: loop body
LE: loop exit
PB: predicated region body
PF: predicated region fallthrough
CT: control target
= control target key end

     0   :  { %vm51_vm0 = vcmask 1044480   ;;  %vm38_vm1 = vcmask 302080   ;;  %v439_v31 = vmov 32   ;;  %vm203_vm2 = vcmask 261120   ;;  %s586_s0 = inlined_call_operand.vmem [shape: f32[37,512], index: 0, kind: input, shape index: {}]   ;;  %s587_s1 = inlined_call_operand.vmem [shape: f32[32,37], index: 1, kind: input, shape index: {}]   ;;  %s588_s2 = inlined_call_operand.vmem [shape: f32[1,33], index: 2, kind: input, shape index: {}]   ;;  %s589_s3 = inlined_call_operand.vmem [shape: f32[1,512], index: 3, kind: output, shape index: {}]  }
   0x1   :  { %v34_v0 = vld [vmem:[%s586_s0 + $0x80] sm:$0x1f]  ;;  %v35_v1 = vld [vmem:[%s586_s0 + $0x88] sm:$0x1f]  ;;  %v36_v2 = vld [vmem:[%s586_s0 + $0x90] sm:$0x1f]  ;;  %422 = vset.pattern.permute.xlu0 %v439_v31 }
   0x2   :  { %397 = vmatpush.msk.msra.mxu0 %vm51_vm0, %v34_v0  ;;  %402 = vmatpush.msk.msra.mxu1 %vm51_vm0, %v35_v1  ;;  %v37_v3 = vld [vmem:[%s586_s0 + $0x98] sm:$0x1f]  ;;  %v30_v4 = vld [vmem:[%s586_s0 + $0x60] sm:$0xff]  ;;  %v31_v5 = vld [vmem:[%s586_s0 + $0x68] sm:$0xff] }
   0x3   :  { %407 = vmatpush.msk.msra.mxu2 %vm51_vm0, %v36_v2  ;;  %412 = vmatpush.msk.msra.mxu3 %vm51_vm0, %v37_v3  ;;  %v32_v6 = vld [vmem:[%s586_s0 + $0x70] sm:$0xff]  ;;  %v33_v7 = vld [vmem:[%s586_s0 + $0x78] sm:$0xff]  ;;  %v26_v8 = vld [vmem:[%s586_s0 + $0x40] sm:$0xff] }
   0x4   :  { %76 = vmatpush.msra.mxu0 %v30_v4  ;;  %105 = vmatpush.msra.mxu1 %v31_v5  ;;  %v27_v9 = vld [vmem:[%s586_s0 + $0x48] sm:$0xff]  ;;  %v28_v10 = vld [vmem:[%s586_s0 + $0x50] sm:$0xff]  ;;  %v29_v11 = vld [vmem:[%s586_s0 + $0x58] sm:$0xff] }
   0x5   :  { %134 = vmatpush.msra.mxu2 %v32_v6  ;;  %163 = vmatpush.msra.mxu3 %v33_v7  ;;  %v22_v12 = vld [vmem:[%s586_s0 + $0x20] sm:$0xff]  ;;  %v23_v13 = vld [vmem:[%s586_s0 + $0x28] sm:$0xff]  ;;  %v24_v14 = vld [vmem:[%s586_s0 + $0x30] sm:$0xff] }
   0x6   :  { %77 = vmatpush.msra.mxu0 %v26_v8  ;;  %106 = vmatpush.msra.mxu1 %v27_v9  ;;  %v25_v15 = vld [vmem:[%s586_s0 + $0x38] sm:$0xff]  ;;  %v18_v16 = vld [vmem:[%s586_s0] sm:$0xff]  ;;  %v19_v17 = vld [vmem:[%s586_s0 + $0x8] sm:$0xff] }
   0x7   :  { %135 = vmatpush.msra.mxu2 %v28_v10  ;;  %164 = vmatpush.msra.mxu3 %v29_v11  ;;  %v20_v18 = vld [vmem:[%s586_s0 + $0x10] sm:$0xff]  ;;  %v21_v19 = vld [vmem:[%s586_s0 + $0x18] sm:$0xff]  ;;  %v14_v20 = vld [vmem:[%s587_s1] sm:$0xff] }
   0x8   :  { %78 = vmatpush.msra.mxu0 %v22_v12  ;;  %107 = vmatpush.msra.mxu1 %v23_v13  ;;  %v15_v21 = vld [vmem:[%s587_s1 + $0x8] sm:$0xff]  ;;  %v16_v22 = vld [vmem:[%s587_s1 + $0x10] sm:$0xff]  ;;  %v17_v23 = vld [vmem:[%s587_s1 + $0x18] sm:$0xff] }
   0x9   :  { %136 = vmatpush.msra.mxu2 %v24_v14  ;;  %165 = vmatpush.msra.mxu3 %v25_v15  ;;  %v196_v30 = vld [vmem:[%s588_s2] sm:$0x1] }
   0xa   :  { %79 = vmatpush.msra.mxu0 %v18_v16  ;;  %108 = vmatpush.msra.mxu1 %v19_v17 }
   0xb   :  { %137 = vmatpush.msra.mxu2 %v20_v18  ;;  %166 = vmatpush.msra.mxu3 %v21_v19 }
   0xc   :  { %398 = vmatmul.msk.f32.vlgmr.msra.gmra.mxu0 %vm38_vm1, %v14_v20  ;;  %403 = vmatmul.msk.f32.vlgmr.msra.gmra.mxu1 %vm38_vm1, %v14_v20 }
   0xd   :  { %408 = vmatmul.msk.f32.vlgmr.msra.gmra.mxu2 %vm38_vm1, %v14_v20  ;;  %413 = vmatmul.msk.f32.vlgmr.msra.gmra.mxu3 %vm38_vm1, %v14_v20 }
   0xe   :  { %199 = vperm.xlu0 %422, %v196_v30  }
  0x14   :  { %399 = vmatmul.msk.f32.gmra.mxu0 %vm38_vm1, %v15_v21  ;;  %404 = vmatmul.msk.f32.gmra.mxu1 %vm38_vm1, %v15_v21 }
  0x15   :  { %409 = vmatmul.msk.f32.gmra.mxu2 %vm38_vm1, %v15_v21  ;;  %414 = vmatmul.msk.f32.gmra.mxu3 %vm38_vm1, %v15_v21 }
  0x1c   :  { %400 = vmatmul.msk.f32.gmra.mxu0 %vm38_vm1, %v16_v22  ;;  %405 = vmatmul.msk.f32.gmra.mxu1 %vm38_vm1, %v16_v22 }
  0x1d   :  { %410 = vmatmul.msk.f32.gmra.mxu2 %vm38_vm1, %v16_v22  ;;  %415 = vmatmul.msk.f32.gmra.mxu3 %vm38_vm1, %v16_v22 }
  0x24   :  { %401 = vmatmul.msk.f32.gmra.mxu0 %vm38_vm1, %v17_v23  ;;  %406 = vmatmul.msk.f32.gmra.mxu1 %vm38_vm1, %v17_v23 }
  0x25   :  { %411 = vmatmul.msk.f32.gmra.mxu2 %vm38_vm1, %v17_v23  ;;  %416 = vmatmul.msk.f32.gmra.mxu3 %vm38_vm1, %v17_v23 }
  0x80   :  { %v200_v58 = vpop.permute.xlu0 %199 }
  0x81   :  { %v202_v59 = vperm.slane %v200_v58, 0 }
  0x89   :  { %v81_v24 = vpop.f32.mrf.mxu0  ;;  %v110_v25 = vpop.f32.mrf.mxu1 }
  0x8a   :  { %v180_v46 = vmax.f32 %v81_v24, 0.0  ;;  %v181_v47 = vmax.f32 %v110_v25, 0.0 }
  0x90   :  { %v139_v26 = vpop.f32.mrf.mxu2  ;;  %v168_v27 = vpop.f32.mrf.mxu3 }
  0x91   :  { %v84_v28 = vpop.f32.mrf.mxu0  ;;  %v113_v29 = vpop.f32.mrf.mxu1  ;;  %v182_v56 = vmax.f32 %v139_v26, 0.0  ;;  %v183_v57 = vmax.f32 %v168_v27, 0.0 }
  0x92   :  { %v184_v44 = vmax.f32 %v84_v28, 0.0  ;;  %v185_v45 = vmax.f32 %v113_v29, 0.0 }
  0x98   :  { %v142_v32 = vpop.f32.mrf.mxu2  ;;  %v171_v33 = vpop.f32.mrf.mxu3 }
  0x99   :  { %v87_v34 = vpop.f32.mrf.mxu0  ;;  %v116_v35 = vpop.f32.mrf.mxu1  ;;  %v186_v54 = vmax.f32 %v142_v32, 0.0  ;;  %v187_v55 = vmax.f32 %v171_v33, 0.0 }
  0x9a   :  { %v188_v40 = vmax.f32 %v87_v34, 0.0  ;;  %v189_v41 = vmax.f32 %v116_v35, 0.0 }
  0xa0   :  { %v145_v36 = vpop.f32.mrf.mxu2  ;;  %v174_v37 = vpop.f32.mrf.mxu3 }
  0xa1   :  { %v90_v38 = vpop.f32.mrf.mxu0  ;;  %v119_v39 = vpop.f32.mrf.mxu1  ;;  %v190_v52 = vmax.f32 %v145_v36, 0.0  ;;  %v191_v53 = vmax.f32 %v174_v37, 0.0 }
  0xa2   :  { %v192_v42 = vmax.f32 %v90_v38, 0.0  ;;  %v193_v43 = vmax.f32 %v119_v39, 0.0 }
  0xa4   :  { %218 = vmatpush.msrb.mxu0 %v192_v42  ;;  %238 = vmatpush.msrb.mxu1 %v193_v43 }
  0xa6   :  { %219 = vmatpush.msrb.mxu0 %v188_v40  ;;  %239 = vmatpush.msrb.mxu1 %v189_v41 }
  0xa8   :  { %v148_v48 = vpop.f32.mrf.mxu2  ;;  %v177_v49 = vpop.f32.mrf.mxu3  ;;  %220 = vmatpush.msrb.mxu0 %v184_v44  ;;  %240 = vmatpush.msrb.mxu1 %v185_v45 }
  0xa9   :  { %v194_v50 = vmax.f32 %v148_v48, 0.0  ;;  %v195_v51 = vmax.f32 %v177_v49, 0.0 }
  0xaa   :  { %221 = vmatpush.msrb.mxu0 %v180_v46  ;;  %241 = vmatpush.msrb.mxu1 %v181_v47 }
  0xab   :  { %258 = vmatpush.msrb.mxu2 %v194_v50  ;;  %278 = vmatpush.msrb.mxu3 %v195_v51 }
  0xac   :  { %418 = vmatmul.msk.f32.vlgmr.msrb.gmra.mxu1 %vm203_vm2, %v196_v30  ;;  %417 = vmatmul.msk.f32.vlgmr.msrb.gmra.mxu0 %vm203_vm2, %v196_v30 }
  0xad   :  { %259 = vmatpush.msrb.mxu2 %v190_v52  ;;  %279 = vmatpush.msrb.mxu3 %v191_v53 }
  0xaf   :  { %260 = vmatpush.msrb.mxu2 %v186_v54  ;;  %280 = vmatpush.msrb.mxu3 %v187_v55 }
  0xb1   :  { %261 = vmatpush.msrb.mxu2 %v182_v56  ;;  %281 = vmatpush.msrb.mxu3 %v183_v57 }
  0xb2   :  { %419 = vmatmul.msk.f32.vlgmr.msrb.gmra.mxu2 %vm203_vm2, %v196_v30  ;;  %420 = vmatmul.msk.f32.vlgmr.msrb.gmra.mxu3 %vm203_vm2, %v196_v30 }
 0x129   :  { %v243_v60 = vpop.f32.mrf.mxu1  ;;  %v223_v61 = vpop.f32.mrf.mxu0 }
 0x12a   :  { %v555_v62 = vadd.f32 %v243_v60, %v202_v59  ;;  %v557_v63 = vadd.f32 %v223_v61, %v202_v59 }
 0x12c   :  { %v287_v0 = vand.u32 2147483647, %v555_v62  ;;  %v286_v1 = vand.u32 2147483647, %v557_v63  ;;  %vm363_vm14 = vcmp.ge.f32.partialorder %v555_v62, 0.0 }
 0x12e   :  { %v291_v2 = vsub.f32 0.0, %v287_v0  ;;  %v290_v3 = vsub.f32 0.0, %v286_v1 }
 0x130   :  { %v296_v4 = vmul.f32 1.442695, %v291_v2  ;;  %v294_v5 = vmul.f32 1.442695, %v290_v3 }
 0x132   :  { %423 = vpow2.f32 %v296_v4 }
 0x133   :  { %425 = vpow2.f32 %v294_v5 }
 0x135   :  { %v263_v6 = vpop.f32.mrf.mxu2  ;;  %v283_v7 = vpop.f32.mrf.mxu3 }
 0x136   :  { %v561_v8 = vadd.f32 %v263_v6, %v202_v59  ;;  %v563_v9 = vadd.f32 %v283_v7, %v202_v59 }
 0x138   :  { %v424_v10 = vpop.eup %423  ;;  %v288_v11 = vand.u32 2147483647, %v561_v8  ;;  %v289_v12 = vand.u32 2147483647, %v563_v9 }
 0x139   :  { %v426_v13 = vpop.eup %425  ;;  %v303_v14 = vadd.f32 1.0, %v424_v10  ;;  %v388_v10 = vlaneseq }
 0x13a   :  { %v302_v15 = vadd.f32 1.0, %v426_v13  ;;  %v292_v16 = vsub.f32 0.0, %v288_v11  ;;  %v293_v17 = vsub.f32 0.0, %v289_v12 }
 0x13b   :  { %427 = vrcp.f32 %v303_v14  ;;  %vm325_vm3 = vweird.f32 %v303_v14  ;;  %v331_v31 = vand.u32 2147483648, %v303_v14  ;;  %v329_v33 = vand.u32 2147483647, %v303_v14 }
 0x13c   :  { %429 = vrcp.f32 %v302_v15  ;;  %v298_v18 = vmul.f32 1.442695, %v292_v16  ;;  %v300_v19 = vmul.f32 1.442695, %v293_v17  ;;  %vm311_vm6 = vweird.f32 %v302_v15 }
 0x13d   :  { %v332_v35 = vor.u32 1.1754944e-38, %v331_v31  ;;  %v315_v36 = vand.u32 2147483647, %v302_v15  ;;  %vm330_vm7 = vcmp.eq.f32.partialorder %v329_v33, 8.507059e+37  ;;  %v317_v39 = vand.u32 2147483648, %v302_v15 }
 0x13e   :  { %431 = vpow2.f32 %v298_v18 }
 0x13f   :  { %433 = vpow2.f32 %v300_v19  ;;  %vm571_vm10 = vcmp.eq.f32.partialorder %v315_v36, 8.507059e+37  ;;  %v318_v48 = vor.u32 1.1754944e-38, %v317_v39 }
 0x141   :  { %v428_v20 = vpop.eup %427 }
 0x142   :  { %v430_v21 = vpop.eup %429  ;;  %v321_v22 = vmul.f32 %v428_v20, %v303_v14  ;;  %vm326_vm4 = vweird.f32 %v428_v20 }
 0x143   :  { %v307_v24 = vmul.f32 %v430_v21, %v302_v15  ;;  %vm327_vm5 = vmor %vm325_vm3, %vm326_vm4  ;;  %vm312_vm8 = vweird.f32 %v430_v21  ;;  %vm364_vm4 = vcmp.ge.f32.partialorder %v561_v8, 0.0 }
 0x144   :  { %v322_v23 = vsub.f32 1.0, %v321_v22  ;;  %v432_v25 = vpop.eup %431  ;;  %vm567_vm9 = vmor %vm311_vm6, %vm312_vm8  ;;  %vm381_vm6 = vcmask 1040384   ;;  %vm362_vm8 = vcmp.ge.f32.partialorder %v557_v63, 0.0 }
 0x145   :  { %v434_v26 = vpop.eup %433  ;;  %v304_v28 = vadd.f32 1.0, %v432_v25  ;;  %v308_v30 = vsub.f32 1.0, %v307_v24 }
 0x146   :  { %v323_v27 = vmul.f32 %v428_v20, %v322_v23  ;;  %v305_v29 = vadd.f32 1.0, %v434_v26 }
 0x147   :  { %435 = vrcp.f32 %v304_v28  ;;  %v309_v34 = vmul.f32 %v430_v21, %v308_v30  ;;  %v343_v49 = vand.u32 2147483647, %v304_v28  ;;  %v345_v50 = vand.u32 2147483648, %v304_v28 }
 0x148   :  { %437 = vrcp.f32 %v305_v29  ;;  %v324_v32 = vadd.f32 %v428_v20, %v323_v27  ;;  %v357_v53 = vand.u32 2147483647, %v305_v29  ;;  %v359_v54 = vand.u32 2147483648, %v305_v29 }
 0x149   :  { %v310_v42 = vadd.f32 %v430_v21, %v309_v34  ;;  %vm339_vm13 = vweird.f32 %v304_v28  ;;  %v346_v59 = vor.u32 1.1754944e-38, %v345_v50  ;;  %vm353_vm0 = vweird.f32 %v305_v29 }
 0x14a   :  { %v328_v38 = vsel %vm327_vm5, %v428_v20, %v324_v32  ;;  %vm344_vm1 = vcmp.eq.f32.partialorder %v343_v49, 8.507059e+37  ;;  %v360_v1 = vor.u32 1.1754944e-38, %v359_v54  ;;  %vm358_vm3 = vcmp.eq.f32.partialorder %v357_v53, 8.507059e+37 }
 0x14b   :  { %v333_v44 = vsel %vm330_vm7, %v332_v35, %v328_v38  ;;  %v314_v56 = vsel %vm567_vm9, %v430_v21, %v310_v42  ;;  %vm365_vm5 = vcmp.ge.f32.partialorder %v563_v9, 0.0  ;;  %vm383_vm7 = vcmask 1042434  }
 0x14c   :  { %v367_v55 = vsub.f32 1.0, %v333_v44  ;;  %v319_v61 = vsel %vm571_vm10, %v318_v48, %v314_v56  ;;  %vm385_vm9 = vcmask 1041408   ;;  %vm390_vm10 = vcmp.lt.s32.totalorder %v388_v10, 512 }
 0x14d   :  { %v436_v37 = vpop.eup %435  ;;  %v366_v7 = vsub.f32 1.0, %v319_v61 }
 0x14e   :  { %v438_v40 = vpop.eup %437  ;;  %v335_v41 = vmul.f32 %v436_v37, %v304_v28  ;;  %vm340_vm11 = vweird.f32 %v436_v37  ;;  %v371_v2 = vsel %vm363_vm14, %v333_v44, %v367_v55 }
 0x14f   :  { %v349_v43 = vmul.f32 %v438_v40, %v305_v29  ;;  %vm354_vm12 = vweird.f32 %v438_v40  ;;  %vm341_vm15 = vmor %vm339_vm13, %vm340_vm11  ;;  %v378_v11 = vrot.slane %v371_v2, 7  ;;  %v370_v16 = vsel %vm362_vm8, %v319_v61, %v366_v7 }
 0x150   :  { %v336_v47 = vsub.f32 1.0, %v335_v41  ;;  %vm355_vm2 = vmor %vm353_vm0, %vm354_vm12 }
 0x151   :  { %v350_v51 = vsub.f32 1.0, %v349_v43  ;;  %v382_v17 = vsel %vm381_vm6, %v370_v16, %v378_v11 }
 0x152   :  { %v337_v52 = vmul.f32 %v436_v37, %v336_v47 }
 0x153   :  { %v351_v57 = vmul.f32 %v438_v40, %v350_v51 }
 0x154   :  { %v338_v58 = vadd.f32 %v436_v37, %v337_v52 }
 0x155   :  { %v352_v60 = vadd.f32 %v438_v40, %v351_v57 }
 0x156   :  { %v342_v0 = vsel %vm341_vm15, %v436_v37, %v338_v58 }
 0x157   :  { %v347_v3 = vsel %vm344_vm1, %v346_v59, %v342_v0  ;;  %v356_v4 = vsel %vm355_vm2, %v438_v40, %v352_v60 }
 0x158   :  { %v368_v5 = vsub.f32 1.0, %v347_v3  ;;  %v361_v6 = vsel %vm358_vm3, %v360_v1, %v356_v4 }
 0x159   :  { %v369_v62 = vsub.f32 1.0, %v361_v6 }
 0x15a   :  { %v372_v12 = vsel %vm364_vm4, %v347_v3, %v368_v5 }
 0x15b   :  { %v379_v13 = vrot.slane %v372_v12, 6  ;;  %v373_v14 = vsel %vm365_vm5, %v361_v6, %v369_v62 }
 0x15c   :  { %v380_v15 = vrot.slane %v373_v14, 5 }
 0x15e   :  { %v384_v18 = vsel %vm383_vm7, %v379_v13, %v380_v15 }
 0x15f   :  { %v386_v19 = vsel %vm385_vm9, %v382_v17, %v384_v18 }
 0x160   :  { %392 = vst.msk [vmem:[%s589_s3] sm:$0xf] %vm390_vm10, %v386_v19 }

</bundles_post_ra>
